<compile_context>
chip_gen: v6e
topology: v6e:2x2x1
jax: 0.10.0
libtpu: 0.0.40
codegen_flags: <defaults>
</compile_context>

<pallas_src>
import functools

import jax
import jax.numpy as jnp
from jax import lax
from jax.experimental import pallas as pl
from jax.experimental.pallas import tpu as pltpu


def _round_up(x, m):
    return ((x + m - 1) // m) * m


def _sumsq_kernel(g_ref, out_ref, *, cps, n_full, tail, exact):
    """Accumulate per-row sum-of-squares of one (bt, fc) gradient block into the
    (1, bt, 128) lane-wise partial accumulator held in the output block (revisited
    across the innermost "arbitrary" feature-chunk grid axis)."""
    k = pl.program_id(2)

    @pl.when(k == 0)
    def _():
        out_ref[...] = jnp.zeros_like(out_ref)

    bt, fc = g_ref.shape
    n_groups = fc // 128

    def accumulate(mask_tail):
        g = g_ref[...].astype(jnp.float32)
        if mask_tail:
            # Static mask for the ragged feature tail (only traced in the tail branch).
            col = lax.broadcasted_iota(jnp.int32, (bt, fc), 1)
            g = jnp.where(col < tail, g, 0.0)
        gg = g * g
        # Fold the 128-lane groups with lane-aligned static slices: pure VALU adds
        # (no cross-lane XLU reduce in the hot loop); tree order keeps the dep-chain short.
        parts = [gg[:, j * 128:(j + 1) * 128] for j in range(n_groups)]
        while len(parts) > 1:
            nxt = [parts[i] + parts[i + 1] for i in range(0, len(parts) - 1, 2)]
            if len(parts) % 2:
                nxt.append(parts[-1])
            parts = nxt
        out_ref[0, :, :] = out_ref[0, :, :] + parts[0]

    if exact:
        # Every grid step maps to a fully valid chunk: no gating, leanest hot loop.
        accumulate(False)
    else:
        c = pl.program_id(0) * cps + k          # global feature-chunk index

        @pl.when(c < n_full)
        def _():
            accumulate(False)

        if tail > 0:
            @pl.when(c == n_full)
            def _():
                accumulate(True)
        # c > last valid chunk (void chunk of an uneven core split): contributes nothing.


def wasserstein_gp_loss(y_real, y_fake, grads_flat, *, l,
                        target_block_bytes=4 * 1024 * 1024,
                        max_batch_tile=64):
    """y_real, y_fake: (B, 1) (or (B,)); grads_flat: (B, F) in native dtype. Returns scalar."""
    B, F = grads_flat.shape
    itemsize = jnp.dtype(grads_flat.dtype).itemsize

    # ---- batch tiling (no HBM padding: boundary blocks DMA only the valid rows) ----
    if B >= 16:
        # Multiple of 8 and <= ceil(B/2): guarantees >= 2 batch blocks for the parallel axis.
        bt = min(max_batch_tile, _round_up(-(-B // 2), 8))
    else:
        bt = B                                   # full-dim block satisfies the sublane rule
    nb = -(-B // bt)

    # ---- feature chunking: lanes multiple of 128, block sized to ~target_block_bytes ----
    f_ceil = _round_up(F, 128)
    fc = _round_up(max(128, target_block_bytes // (bt * itemsize)), 128)
    fc = min(fc, f_ceil)
    n_chunks = -(-F // fc)
    n_full = F // fc
    tail = F - n_full * fc

    # ---- v7x core split over feature chunks when the batch gives only one block ----
    n_splits = 1 if nb >= 2 else min(2, n_chunks)
    cps = -(-n_chunks // n_splits)               # chunks per split
    exact = (tail == 0) and (n_splits * cps == n_chunks)

    last_chunk = n_chunks - 1
    if n_splits * cps > n_chunks:
        def in_map(s, bi, k):                    # clamp void chunks to a valid block (gated off)
            return (bi, jnp.minimum(s * cps + k, last_chunk))
    else:
        def in_map(s, bi, k):
            return (bi, s * cps + k)

    kernel = functools.partial(_sumsq_kernel, cps=cps, n_full=n_full,
                               tail=tail, exact=exact)

    partials = pl.pallas_call(
        kernel,
        out_shape=jax.ShapeDtypeStruct((n_splits * nb, bt, 128), jnp.float32),
        grid_spec=pltpu.PrefetchScalarGridSpec(
            num_scalar_prefetch=0,
            grid=(n_splits, nb, cps),
            in_specs=[pl.BlockSpec((bt, fc), in_map)],
            out_specs=pl.BlockSpec((1, bt, 128),
                                   lambda s, bi, k: (s * nb + bi, 0, 0)),
        ),
        compiler_params=pltpu.CompilerParams(
            dimension_semantics=("parallel", "parallel", "arbitrary"),
            vmem_limit_bytes=32 * 1024 * 1024,   # 2 buffers x ~4 MiB blocks + tiny outputs
        ),
        cost_estimate=pl.CostEstimate(
            flops=2 * B * F,
            transcendentals=0,
            bytes_accessed=B * F * itemsize + n_splits * nb * bt * 128 * 4,
        ),
    )(grads_flat)

    # ---- tiny XLA epilogue: fold splits/lanes, sqrt, penalty, Wasserstein mean ----
    sq = partials.reshape(n_splits, nb, bt, 128).sum(axis=(0, 3))
    sq = sq.reshape(nb * bt)[:B]                 # drop stale boundary-batch rows
    # TODO(synk): forward-only — no custom_vjp for the penalty (d/dg = 2*l*(||g||-1)*g/||g||),
    # so this pallas_call does not replicate create_graph=True double-backprop.
    norm = jnp.sqrt(sq)
    pen = l * (norm - 1.0) ** 2
    y_diff = (y_fake.reshape(B) - y_real.reshape(B)).astype(jnp.float32)
    return jnp.mean(y_diff + pen)


def wgan_gp_loss_forward(y_real, y_fake, x_mix, critic_fn, *, l):
    """Full forward matching the PyTorch module.

    torch.autograd.grad(y_mix, x_mix, ones_like(y_mix)) is computed via jax.vjp on the critic
    graph (plain-JAX glue); everything downstream of the gradient runs in Pallas."""
    y_mix, vjp_fn = jax.vjp(critic_fn, x_mix)
    (grads,) = vjp_fn(jnp.ones_like(y_mix))                  # d sum(y_mix) / d x_mix
    grads_flat = grads.reshape(y_real.shape[0], -1)          # (B, C*H*W), native dtype
    return wasserstein_gp_loss(y_real, y_fake, grads_flat, l=l)


def _ref_loss(y_real, y_fake, grads_flat, l):
    sq = jnp.sum(grads_flat.astype(jnp.float32) ** 2, axis=-1)
    return jnp.mean((y_fake.reshape(-1) - y_real.reshape(-1)).astype(jnp.float32)
                    + l * (jnp.sqrt(sq) - 1.0) ** 2)


if __name__ == "__main__":
    key = jax.random.PRNGKey(0)
    B, C, H, W = 2, 4, 16, 16
    F = C * H * W
    LAMBDA = 10.0

    k1, k2, k3, k4, k5 = jax.random.split(key, 5)

    # Deterministic synthetic critic D: NCHW input -> (B, 1) score.
    w = jax.random.normal(k1, (F, 1), jnp.float32) * 0.02
    b = jnp.zeros((1,), jnp.float32)

    def critic_fn(x):
        return jnp.tanh(x.reshape(x.shape[0], -1) @ w) @ jnp.ones((1, 1), jnp.float32) + b

    y_real = jax.random.normal(k2, (B, 1), jnp.float32)
    y_fake = jax.random.normal(k3, (B, 1), jnp.float32)
    x_mix = jax.random.normal(k4, (B, C, H, W), jnp.float32)

    loss = wgan_gp_loss_forward(y_real, y_fake, x_mix, critic_fn, l=LAMBDA)
    loss = jax.block_until_ready(loss)

    # Pure-JAX reference of the full loss math (through the critic's vjp).
    y_mix_ref, vjp_fn = jax.vjp(critic_fn, x_mix)
    (g_ref,) = vjp_fn(jnp.ones_like(y_mix_ref))
    ref = _ref_loss(y_real, y_fake, g_ref.reshape(B, -1), LAMBDA)
    assert jnp.allclose(loss, ref, rtol=1e-5, atol=1e-5), (loss, ref)

    # Extra shape coverage: ragged batch tile + ragged feature tail (no HBM padding anywhere).
    kb1, kb2, kb3 = jax.random.split(k5, 3)
    for (Bx, Fx, tgt) in [(20, 300, 4 * 1024 * 1024),   # batch tiling, boundary batch block, tail mask
                          (4, 1000, 4096),              # 2-way feature split + tail chunk
                          (4, 600, 2048)]:              # uneven split (void-chunk clamp path)
        yr = jax.random.normal(kb1, (Bx, 1), jnp.float32)
        yf = jax.random.normal(kb2, (Bx, 1), jnp.float32)
        g = jax.random.normal(kb3, (Bx, Fx), jnp.float32)
        out = wasserstein_gp_loss(yr, yf, g, l=LAMBDA, target_block_bytes=tgt)
        out = jax.block_until_ready(out)
        ref2 = _ref_loss(yr, yf, g, LAMBDA)
        assert jnp.allclose(out, ref2, rtol=1e-4, atol=1e-4), (Bx, Fx, out, ref2)

    print("KERNEL_OK")
</pallas_src>

<mosaic_0001>
module attributes {stable_mosaic.version = 11 : i64} {
  func.func @_sumsq_kernel(%arg0: i32, %arg1: i32, %arg2: i32, %arg3: memref<2x1024xf32, #tpu.memory_space<vmem>>, %arg4: memref<1x2x128xf32, #tpu.memory_space<vmem>>) attributes {dimension_semantics = [#tpu.dimension_semantics<parallel>, #tpu.dimension_semantics<parallel>, #tpu.dimension_semantics<arbitrary>], iteration_bounds = array<i64: 1, 1, 1>, scalar_prefetch = 0 : i64, scratch_operands = 0 : i64, tpu.core_type = #tpu.core_type<tc>, window_params = [{transform_indices = @transform_0, window_bounds = array<i64: 2, 1024>}, {transform_indices = @transform_1, window_bounds = array<i64: 1, 2, 128>}]} {
    %c0_i32 = arith.constant 0 : i32
    %0 = arith.cmpi eq, %arg2, %c0_i32 : i32
    %1 = arith.extui %0 : i1 to i32
    %c0_i32_0 = arith.constant 0 : i32
    %2 = arith.cmpi ne, %1, %c0_i32_0 : i32
    scf.if %2 {
      %cst = arith.constant 0.000000e+00 : f32
      %26 = vector.broadcast %cst : f32 to vector<1x2x128xf32>
      %c0_8 = arith.constant 0 : index
      %c0_9 = arith.constant 0 : index
      %c0_10 = arith.constant 0 : index
      %27 = vector.load %arg4[%c0_8, %c0_9, %c0_10] : memref<1x2x128xf32, #tpu.memory_space<vmem>>, vector<1x2x128xf32>
      tpu.vector_store %arg4[%c0_8, %c0_9, %c0_10], %26 {strides = array<i32>} : memref<1x2x128xf32, #tpu.memory_space<vmem>>, vector<1x2x128xf32>,
    } else {
    }
    %c0 = arith.constant 0 : index
    %c0_1 = arith.constant 0 : index
    %3 = vector.load %arg3[%c0, %c0_1] : memref<2x1024xf32, #tpu.memory_space<vmem>>, vector<2x1024xf32>
    %4 = arith.mulf %3, %3 : vector<2x1024xf32>
    %5 = vector.extract_strided_slice %4 {offsets = [0, 0], sizes = [2, 128], strides = [1, 1]} : vector<2x1024xf32> to vector<2x128xf32>
    %6 = vector.extract_strided_slice %4 {offsets = [0, 128], sizes = [2, 128], strides = [1, 1]} : vector<2x1024xf32> to vector<2x128xf32>
    %7 = vector.extract_strided_slice %4 {offsets = [0, 256], sizes = [2, 128], strides = [1, 1]} : vector<2x1024xf32> to vector<2x128xf32>
    %8 = vector.extract_strided_slice %4 {offsets = [0, 384], sizes = [2, 128], strides = [1, 1]} : vector<2x1024xf32> to vector<2x128xf32>
    %9 = vector.extract_strided_slice %4 {offsets = [0, 512], sizes = [2, 128], strides = [1, 1]} : vector<2x1024xf32> to vector<2x128xf32>
    %10 = vector.extract_strided_slice %4 {offsets = [0, 640], sizes = [2, 128], strides = [1, 1]} : vector<2x1024xf32> to vector<2x128xf32>
    %11 = vector.extract_strided_slice %4 {offsets = [0, 768], sizes = [2, 128], strides = [1, 1]} : vector<2x1024xf32> to vector<2x128xf32>
    %12 = vector.extract_strided_slice %4 {offsets = [0, 896], sizes = [2, 128], strides = [1, 1]} : vector<2x1024xf32> to vector<2x128xf32>
    %13 = arith.addf %5, %6 : vector<2x128xf32>
    %14 = arith.addf %7, %8 : vector<2x128xf32>
    %15 = arith.addf %9, %10 : vector<2x128xf32>
    %16 = arith.addf %11, %12 : vector<2x128xf32>
    %17 = arith.addf %13, %14 : vector<2x128xf32>
    %18 = arith.addf %15, %16 : vector<2x128xf32>
    %19 = arith.addf %17, %18 : vector<2x128xf32>
    %c0_2 = arith.constant 0 : index
    %c0_3 = arith.constant 0 : index
    %c0_4 = arith.constant 0 : index
    %20 = vector.load %arg4[%c0_2, %c0_3, %c0_4] : memref<1x2x128xf32, #tpu.memory_space<vmem>>, vector<1x2x128xf32>
    %21 = vector.shape_cast %20 : vector<1x2x128xf32> to vector<2x128xf32>
    %22 = arith.addf %21, %19 : vector<2x128xf32>
    %c0_5 = arith.constant 0 : index
    %c0_6 = arith.constant 0 : index
    %c0_7 = arith.constant 0 : index
    %23 = vector.load %arg4[%c0_5, %c0_6, %c0_7] : memref<1x2x128xf32, #tpu.memory_space<vmem>>, vector<1x2x128xf32>
    %24 = vector.shape_cast %23 : vector<1x2x128xf32> to vector<2x128xf32>
    %25 = vector.shape_cast %22 : vector<2x128xf32> to vector<1x2x128xf32>
    tpu.vector_store %arg4[%c0_5, %c0_6, %c0_7], %25 {strides = array<i32>} : memref<1x2x128xf32, #tpu.memory_space<vmem>>, vector<1x2x128xf32>,
    return
  }
  func.func @transform_0(%arg0: i32, %arg1: i32, %arg2: i32) -> (i32, i32) {
    %c1_i32 = arith.constant 1 : i32
    %0 = arith.muli %arg0, %c1_i32 : i32
    %1 = arith.addi %0, %arg2 : i32
    %c0_i32 = arith.constant 0 : i32
    return %arg1, %1 : i32, i32
  }
  func.func @transform_1(%arg0: i32, %arg1: i32, %arg2: i32) -> (i32, i32, i32) {
    %c1_i32 = arith.constant 1 : i32
    %0 = arith.muli %arg0, %c1_i32 : i32
    %1 = arith.addi %0, %arg1 : i32
    %c0_i32 = arith.constant 0 : i32
    %c0_i32_0 = arith.constant 0 : i32
    %c0_i32_1 = arith.constant 0 : i32
    return %1, %c0_i32, %c0_i32_0 : i32, i32, i32
  }
}

</mosaic_0001>

<bundles_post_ra>
// kernel: tpu_custom_call.1
= control target key start
LH: loop header
LB: loop body
LE: loop exit
PB: predicated region body
PF: predicated region fallthrough
CT: control target
= control target key end

     0   :  { %6 = vsyncpa [#allocation3], 0  ;;  %s145_s0 = inlined_call_operand.hbm [shape: f32[2,1024], index: 0, kind: input, shape index: {}]   ;;  %s146_s1 = inlined_call_operand.hbm [shape: f32[1,2,128], index: 1, kind: output, shape index: {}]  }
   0x1   :  { %7 = vsyncpa [#allocation4], 0  ;;  %s126_s6 = smov [#allocation2]  }
   0x2   :  { %s18_s7 = sshll.u32 %s126_s6, 4  ;;  %s19_s7 = int_to_ptr.vmem [resolvable:$true] %s18_s7 }
   0x3   :  { %s90_s8 = scalar_lea.vmem %s19_s7, 256  ;;  %p95_p1 = scmp.lt.s32.totalorder %s19_s7, %s19_s7 }
   0x4   :  { %p91_p0 = scmp.ne.s32.totalorder %s19_s7, %s90_s8  ;;  %p96_p2 = scmp.lt.s32.totalorder %s90_s8, %s90_s8 }
   0x6   :  { %p97_p3 = por %p96_p2, %p95_p1 }
   0x8   :  { %p98_p4 = pnand %p97_p3, %p91_p0 }
   0xa   :  { %101 = shalt.err (!%p98_p4)
}
   0xb   :  { %21 = dma.hbm_to_vmem [thread:$0]  %s145_s0, 256, %s19_s7, [#allocation3]  }
   0xc   :  { %122 = dma.done.wait [#allocation3], 256  }
   0xd   :  { %123 = vsyncadd [#allocation3], 4294967040  ;;  %v127_v0 = vmov 0.0   ;;  %v33_v1 = vld [vmem:[#allocation2] sm:$0xff]  ;;  %v34_v2 = vld [vmem:[#allocation2 + $0x8] sm:$0xff]  ;;  %s128_s0 = smov [#allocation5]  }
   0xe   :  { %32 = vst [vmem:[#allocation5] sm:$0x3] %v127_v0  ;;  %v35_v3 = vmul.f32 %v33_v1, %v33_v1  ;;  %v36_v4 = vmul.f32 %v34_v2, %v34_v2  ;;  %s70_s11 = sshll.u32 %s128_s0, 4  ;;  %s71_s11 = int_to_ptr.vmem [resolvable:$true] %s70_s11 }
   0xf   :  { %s102_s12 = scalar_lea.vmem %s71_s11, 32  ;;  %p107_p6 = scmp.lt.s32.totalorder %s71_s11, %s71_s11 }
  0x10   :  { %v38_v5 = vrot.slane %v35_v3, 2  ;;  %v41_v6 = vrot.slane %v35_v3, 4  ;;  %v43_v7 = vrot.slane %v35_v3, 6  ;;  %v47_v8 = vrot.slane %v36_v4, 2  ;;  %p103_p5 = scmp.ne.s32.totalorder %s71_s11, %s102_s12  ;;  %p108_p7 = scmp.lt.s32.totalorder %s102_s12, %s102_s12 }
  0x11   :  { %v50_v9 = vrot.slane %v36_v4, 4  ;;  %v52_v10 = vrot.slane %v36_v4, 6 }
  0x12   :  { %v40_v11 = vadd.f32 %v38_v5, %v35_v3  ;;  %v45_v12 = vadd.f32 %v43_v7, %v41_v6  ;;  %v49_v13 = vadd.f32 %v47_v8, %v36_v4  ;;  %p109_p8 = por %p108_p7, %p107_p6 }
  0x13   :  { %v54_v14 = vadd.f32 %v52_v10, %v50_v9 }
  0x14   :  { %v55_v15 = vadd.f32 %v45_v12, %v40_v11  ;;  %p110_p9 = pnand %p109_p8, %p103_p5 }
  0x15   :  { %v56_v16 = vadd.f32 %v54_v14, %v49_v13  ;;  %v58_v17 = vld [vmem:[#allocation5] sm:$0x3] }
  0x17   :  { %v57_v18 = vadd.f32 %v56_v16, %v55_v15 }
  0x19   :  { %v59_v19 = vadd.f32 %v58_v17, %v57_v18 }
  0x1b   :  { %60 = vst [vmem:[#allocation5] sm:$0x3] %v59_v19 }
  0x1c   :  { %113 = shalt.err (!%p110_p9)
}
  0x1d   :  { %73 = dma.vmem_to_hbm [thread:$0]  %s71_s11, 32, %s146_s1, [#allocation4]  }
  0x1e   :  { %124 = dma.done.wait [#allocation4], 32  }
  0x1f   :  { %125 = vsyncadd [#allocation4], 4294967264 }
  0x20   :  { %77 = vsyncpa [#allocation3], 1 }
  0x21   :  { %78 = vsyncpa [#allocation4], 1 }

</bundles_post_ra>
